<compile_context>
chip_gen: v6e
topology: v6e:2x2x1
jax: 0.10.0
libtpu: 0.0.40
codegen_flags: <defaults>
</compile_context>

<pallas_src>
import functools
import math

import numpy as np
import jax
import jax.numpy as jnp
from jax import lax
from jax.experimental import pallas as pl
from jax.experimental.pallas import tpu as pltpu

PSP_SIZES = (1, 3, 6, 8)
BN_EPS = 1e-5


def _round_up(x, m):
    return ((x + m - 1) // m) * m


@functools.lru_cache(maxsize=None)
def adaptive_pool_matrix(H, W, sizes=PSP_SIZES):
    """(H*W, S) matrix whose column j averages the PyTorch AdaptiveAvgPool2d
    bin corresponding to PSP output position j."""
    cols = []
    for s in sizes:
        for i in range(s):
            h0 = (i * H) // s
            h1 = ((i + 1) * H + s - 1) // s  # ceil
            for j in range(s):
                w0 = (j * W) // s
                w1 = ((j + 1) * W + s - 1) // s
                m = np.zeros((H, W), np.float32)
                m[h0:h1, w0:w1] = 1.0 / ((h1 - h0) * (w1 - w0))
                cols.append(m.reshape(-1))
    return np.stack(cols, axis=1)  # (HW, S)


def _pick_hw_tile(HW, target):
    """Largest multiple of 128 that divides HW and is <= target (else HW)."""
    if HW % 128 != 0:
        return HW
    best, t = 128, 256
    limit = min(HW, max(target, 128))
    while t <= limit:
        if HW % t == 0:
            best = t
        t += 128
    return best


def _vmem_limit_bytes(Cin, Ck_pad, Cv_pad, Ckv_pad, Cout, S, THW):
    bf, f32 = 2, 4
    pass1 = (2 * Cin * THW * bf                 # x tile (double-buffered)
             + 2 * THW * S * bf                 # P tile
             + 2 * Ck_pad * THW * bf            # kq output tile
             + 2 * (Ck_pad + Cout) * S * f32    # keypool / wsmall outputs
             + 2 * Ckv_pad * (Cin + 1) * bf     # wkv + bkv
             + 2 * Cout * Cv_pad * f32          # ww
             + (Ck_pad + Cv_pad) * S * f32      # accumulator scratch
             + 3 * Ckv_pad * THW * f32)         # kv/kq/v f32 intermediates
    pass2 = (2 * Ck_pad * THW * bf
             + 2 * (Ck_pad + Cout) * S * f32
             + 2 * Cout * THW * f32             # output tile
             + 4 * S * THW * f32                # sim / e intermediates
             + Cout * THW * f32)
    est = max(pass1, pass2)
    # Cap at v7x's 64 MiB physical VMEM; never below the 32 MiB scoped default.
    return int(min(64 * 2 ** 20, max(32 * 2 ** 20, 2 * est)))


def _pool_kernel(x_ref, p_ref, wkv_ref, bkv_ref, ww_ref,
                 kq_ref, keypool_ref, wsmall_ref,
                 keypool_acc, valpool_acc, *, key_ch_pad):
    hw = pl.program_id(1)

    @pl.when(hw == 0)
    def _init():
        keypool_acc[...] = jnp.zeros(keypool_acc.shape, keypool_acc.dtype)
        valpool_acc[...] = jnp.zeros(valpool_acc.shape, valpool_acc.dtype)

    x = x_ref[0]                    # (Cin, THW)  bf16
    P = p_ref[...]                  # (THW, S)    bf16

    # Fused key/query + value 1x1 conv: one bf16 MXU matmul, f32 accumulation.
    kv = jnp.dot(wkv_ref[...], x, preferred_element_type=jnp.float32) + bkv_ref[...]
    kq = jnp.maximum(kv[:key_ch_pad], 0.0)   # (Ck_pad, THW) f32, 16-row aligned split
    v = kv[key_ch_pad:]                      # (Cv_pad, THW) f32
    kq_bf = kq.astype(jnp.bfloat16)

    kq_ref[0] = kq_bf                        # bf16 query tile for pass 2 (HBM)
    # PSP pooling as (C, THW) @ (THW, S) matmuls -> no HW-scale transposes.
    keypool_acc[...] += jnp.dot(kq_bf, P, preferred_element_type=jnp.float32)
    valpool_acc[...] += jnp.dot(v.astype(jnp.bfloat16), P,
                                preferred_element_type=jnp.float32)

    @pl.when(hw == pl.num_programs(1) - 1)
    def _finalize():
        keypool_ref[0] = keypool_acc[...]
        # Fold the output 1x1 conv into the pooled values (tiny matmul).
        wsmall_ref[0] = jnp.dot(ww_ref[...], valpool_acc[...],
                                preferred_element_type=jnp.float32)


def _attn_kernel(kq_ref, keypool_ref, wsmall_ref, bw_ref, o_ref, *, normalize_after):
    kq = kq_ref[0]                              # (Ck_pad, THW) bf16
    kp = keypool_ref[0].astype(jnp.bfloat16)    # (Ck_pad, S)

    # sim[s, p] = sum_c kp[c, s] * kq[c, p]; only the tiny operand is in
    # transposed-lhs position (no HW-scale XLU work).
    sim = lax.dot_general(kp, kq, (((0,), (0,)), ((), ())),
                          preferred_element_type=jnp.float32)   # (S, THW) f32

    # Softmax statistics in f32 (works on all of v5e/v6e/v7x).
    sim = sim - jnp.max(sim, axis=0, keepdims=True)
    e = jnp.exp(sim)                                             # (S, THW) f32
    denom = jnp.sum(e, axis=0, keepdims=True)                    # (1, THW)
    r = pl.reciprocal(denom, approx=True)
    r = r * (2.0 - denom * r)          # one Newton step -> ~f32-accurate 1/denom

    w_small = wsmall_ref[0].astype(jnp.bfloat16)                 # (Cout, S)
    if normalize_after:
        # Cout <= S: normalize the (Cout, THW) context, not the (S, THW) probs.
        ctx = jnp.dot(w_small, e.astype(jnp.bfloat16),
                      preferred_element_type=jnp.float32)
        out = ctx * r + bw_ref[...]
    else:
        att = (e * r).astype(jnp.bfloat16)
        out = jnp.dot(w_small, att, preferred_element_type=jnp.float32) + bw_ref[...]
    o_ref[0] = out.astype(o_ref.dtype)


def self_attention_block(x_nchw, params, *, scale=1, hw_tile_target=2048,
                         out_dtype=jnp.float32):
    # Only scale=1 (the module default) is supported: MaxPool2d(1,1) is identity.
    assert scale == 1, "scale > 1 (MaxPool downsampling) is not implemented"
    N, Cin, H, W = x_nchw.shape
    HW = H * W
    Ck = params["wk"].shape[0]
    Cv = params["wv"].shape[0]
    Cout = params["ww"].shape[0]
    assert Ck > 0 and Cv > 0           # Ck**-0.25 fold requires a positive factor
    S = sum(s * s for s in PSP_SIZES)

    # Pad the key/value channel splits to a 16-row boundary so the
    # kv[:Ck_pad] / kv[Ck_pad:] slices are free aligned views.
    Ck_pad = _round_up(Ck, 16)
    Cv_pad = _round_up(Cv, 16)
    Ckv_pad = Ck_pad + Cv_pad

    # Fold BatchNorm (eval mode) and the Ck**-0.5 similarity scale (split as
    # Ck**-0.25 on the shared key/query branch; positive, so it commutes with
    # the ReLU) into the 1x1 conv weights.
    bn_scale = params["bn_gamma"] / jnp.sqrt(params["bn_var"] + BN_EPS)        # (Ck,)
    sfold = float(Ck) ** (-0.25)
    wk_eff = params["wk"] * bn_scale[:, None] * sfold                          # (Ck, Cin)
    bk_eff = ((params["bk"] - params["bn_mean"]) * bn_scale + params["bn_beta"]) * sfold

    wkv = jnp.zeros((Ckv_pad, Cin), jnp.float32)
    wkv = wkv.at[:Ck].set(wk_eff).at[Ck_pad:Ck_pad + Cv].set(params["wv"])
    bkv = jnp.zeros((Ckv_pad,), jnp.float32)
    bkv = bkv.at[:Ck].set(bk_eff).at[Ck_pad:Ck_pad + Cv].set(params["bv"])
    bkv = bkv[:, None]                                                         # (Ckv_pad, 1)
    ww = jnp.zeros((Cout, Cv_pad), jnp.float32).at[:, :Cv].set(params["ww"])   # (Cout, Cv_pad)
    bw = params["bw"][:, None]                                                 # (Cout, 1)

    # Static operands cast to bf16 in the wrapper (half the DMA bytes).
    P = jnp.asarray(adaptive_pool_matrix(H, W), jnp.bfloat16)                  # (HW, S)
    x_t = x_nchw.reshape(N, Cin, HW).astype(jnp.bfloat16)                      # (N, Cin, HW)
    wkv_bf = wkv.astype(jnp.bfloat16)

    THW = _pick_hw_tile(HW, hw_tile_target)
    num_hw = HW // THW
    vmem_limit = _vmem_limit_bytes(Cin, Ck_pad, Cv_pad, Ckv_pad, Cout, S, THW)

    # ---------------- Pass 1: fused conv + PSP pooling (HW reduction) --------
    pool_flops = N * (2 * Ckv_pad * Cin * HW + 2 * Ckv_pad * S * HW
                      + 2 * Cout * Cv_pad * S)
    pool_bytes = (N * Cin * HW * 2 + HW * S * 2 + N * Ck_pad * HW * 2
                  + N * (Ck_pad + Cout) * S * 4 + Ckv_pad * (Cin + 1) * 2
                  + Cout * Cv_pad * 4)
    kq_all, keypool, wsmall = pl.pallas_call(
        functools.partial(_pool_kernel, key_ch_pad=Ck_pad),
        out_shape=(
            jax.ShapeDtypeStruct((N, Ck_pad, HW), jnp.bfloat16),
            jax.ShapeDtypeStruct((N, Ck_pad, S), jnp.float32),
            jax.ShapeDtypeStruct((N, Cout, S), jnp.float32),
        ),
        grid_spec=pltpu.PrefetchScalarGridSpec(
            num_scalar_prefetch=0,
            grid=(N, num_hw),
            in_specs=[
                pl.BlockSpec((1, Cin, THW), lambda n, h: (n, 0, h)),
                pl.BlockSpec((THW, S), lambda n, h: (h, 0)),
                pl.BlockSpec((Ckv_pad, Cin), lambda n, h: (0, 0)),
                pl.BlockSpec((Ckv_pad, 1), lambda n, h: (0, 0)),
                pl.BlockSpec((Cout, Cv_pad), lambda n, h: (0, 0)),
            ],
            out_specs=[
                pl.BlockSpec((1, Ck_pad, THW), lambda n, h: (n, 0, h)),
                pl.BlockSpec((1, Ck_pad, S), lambda n, h: (n, 0, 0)),
                pl.BlockSpec((1, Cout, S), lambda n, h: (n, 0, 0)),
            ],
            scratch_shapes=[
                pltpu.VMEM((Ck_pad, S), jnp.float32),
                pltpu.VMEM((Cv_pad, S), jnp.float32),
            ],
        ),
        compiler_params=pltpu.CompilerParams(
            dimension_semantics=("parallel", "arbitrary"),
            vmem_limit_bytes=vmem_limit),
        cost_estimate=pl.CostEstimate(flops=int(pool_flops), transcendentals=0,
                                      bytes_accessed=int(pool_bytes)),
    )(x_t, P, wkv_bf, bkv, ww)

    # ---------------- Pass 2: similarity + softmax + context per HW tile -----
    attn_flops = N * (2 * Ck_pad * S * HW + 2 * Cout * S * HW)
    attn_bytes = N * (Ck_pad * HW * 2 + Ck_pad * S * 4 + Cout * S * 4
                      + Cout * HW * jnp.dtype(out_dtype).itemsize)
    out = pl.pallas_call(
        functools.partial(_attn_kernel, normalize_after=(Cout <= S)),
        out_shape=jax.ShapeDtypeStruct((N, Cout, HW), out_dtype),
        grid_spec=pltpu.PrefetchScalarGridSpec(
            num_scalar_prefetch=0,
            grid=(N, num_hw),
            in_specs=[
                pl.BlockSpec((1, Ck_pad, THW), lambda n, h: (n, 0, h)),
                pl.BlockSpec((1, Ck_pad, S), lambda n, h: (n, 0, 0)),
                pl.BlockSpec((1, Cout, S), lambda n, h: (n, 0, 0)),
                pl.BlockSpec((Cout, 1), lambda n, h: (0, 0)),
            ],
            out_specs=pl.BlockSpec((1, Cout, THW), lambda n, h: (n, 0, h)),
        ),
        compiler_params=pltpu.CompilerParams(
            dimension_semantics=("parallel", "parallel"),
            vmem_limit_bytes=vmem_limit),
        cost_estimate=pl.CostEstimate(flops=int(attn_flops),
                                      transcendentals=int(N * S * HW),
                                      bytes_accessed=int(attn_bytes)),
    )(kq_all, keypool, wsmall, bw)

    return out.reshape(N, Cout, H, W)   # already NCHW-ordered: free reshape


def init_params(key, in_ch, key_ch, val_ch, out_ch):
    ks = jax.random.split(key, 8)
    p = {}
    p["wk"] = jax.random.normal(ks[0], (key_ch, in_ch), jnp.float32) / math.sqrt(in_ch)
    p["bk"] = 0.1 * jax.random.normal(ks[1], (key_ch,), jnp.float32)
    p["bn_gamma"] = 1.0 + 0.1 * jax.random.normal(ks[2], (key_ch,), jnp.float32)
    p["bn_beta"] = 0.1 * jax.random.normal(ks[3], (key_ch,), jnp.float32)
    p["bn_mean"] = 0.1 * jax.random.normal(ks[4], (key_ch,), jnp.float32)
    p["bn_var"] = jnp.abs(jax.random.normal(ks[5], (key_ch,), jnp.float32)) + 0.5
    p["wv"] = jax.random.normal(ks[6], (val_ch, in_ch), jnp.float32) / math.sqrt(in_ch)
    p["bv"] = 0.1 * jax.random.normal(ks[7], (val_ch,), jnp.float32)
    # W conv: zero init, faithful to nn.init.constant_(self.W.weight/bias, 0)
    p["ww"] = jnp.zeros((out_ch, val_ch), jnp.float32)
    p["bw"] = jnp.zeros((out_ch,), jnp.float32)
    return p


def forward_ref(x, p):
    """Pure-numpy f32 reference mirroring the PyTorch forward (BN in eval mode)."""
    x = np.asarray(x, np.float32)
    N, Cin, H, W = x.shape

    def conv1x1(t, w, b):
        return np.einsum("nchw,oc->nohw", t, np.asarray(w)) + np.asarray(b)[None, :, None, None]

    def psp(t):
        n, c = t.shape[:2]
        outs = []
        for s in PSP_SIZES:
            pooled = np.zeros((n, c, s, s), np.float32)
            for i in range(s):
                h0, h1 = (i * H) // s, ((i + 1) * H + s - 1) // s
                for j in range(s):
                    w0, w1 = (j * W) // s, ((j + 1) * W + s - 1) // s
                    pooled[:, :, i, j] = t[:, :, h0:h1, w0:w1].mean(axis=(2, 3))
            outs.append(pooled.reshape(n, c, -1))
        return np.concatenate(outs, -1)

    gamma, beta = np.asarray(p["bn_gamma"]), np.asarray(p["bn_beta"])
    mean, var = np.asarray(p["bn_mean"]), np.asarray(p["bn_var"])

    q = conv1x1(x, p["wk"], p["bk"])
    q = (q - mean[None, :, None, None]) / np.sqrt(var + BN_EPS)[None, :, None, None]
    q = q * gamma[None, :, None, None] + beta[None, :, None, None]
    q = np.maximum(q, 0.0)
    v = conv1x1(x, p["wv"], p["bv"])

    value = psp(v).transpose(0, 2, 1)                    # (N, S, Cv)
    Ck = q.shape[1]
    query = q.reshape(N, Ck, -1).transpose(0, 2, 1)      # (N, HW, Ck)
    key = psp(q)                                         # (N, Ck, S)

    sim = np.matmul(query, key) * (Ck ** -0.5)
    sim = sim - sim.max(-1, keepdims=True)
    e = np.exp(sim)
    att = e / e.sum(-1, keepdims=True)
    ctx = np.matmul(att, value)                          # (N, HW, Cv)
    Cv = value.shape[-1]
    ctx = ctx.transpose(0, 2, 1).reshape(N, Cv, H, W)
    return conv1x1(ctx, p["ww"], p["bw"])


if __name__ == "__main__":
    N, Cin, H, W = 2, 4, 16, 16
    Ck, Cv = 8, 8
    Cout = Cin  # out_channels=None -> in_channels

    key = jax.random.PRNGKey(0)
    kx, kp = jax.random.split(key)
    x = jax.random.normal(kx, (N, Cin, H, W), jnp.float32)
    params = init_params(kp, Cin, Ck, Cv, Cout)

    # Faithful module forward (zero-initialized W conv -> zero output).
    # hw_tile_target=128 forces 2 HW tiles so the two-pass accumulation path
    # is exercised even at the tiny test spatial size.
    out = jax.block_until_ready(self_attention_block(x, params, hw_tile_target=128))
    assert out.shape == (N, Cout, H, W)
    ref = forward_ref(x, params)
    assert np.allclose(np.asarray(out), ref, atol=1e-5)

    # Full attention path with a non-zero output conv, checked against the f32
    # reference (bf16 MXU operands -> relaxed element tolerances + global check).
    test_params = dict(params)
    test_params["ww"] = 0.1 * jax.random.normal(jax.random.PRNGKey(1), (Cout, Cv), jnp.float32)
    test_params["bw"] = 0.1 * jax.random.normal(jax.random.PRNGKey(2), (Cout,), jnp.float32)
    ref2 = forward_ref(x, test_params)

    for tile_target in (128, 2048):   # tiled and single-tile HW paths
        out2 = np.asarray(jax.block_until_ready(
            self_attention_block(x, test_params, hw_tile_target=tile_target)))
        assert np.allclose(out2, ref2, rtol=6e-2, atol=1e-2), float(np.abs(out2 - ref2).max())
        rel = np.linalg.norm(out2 - ref2) / (np.linalg.norm(ref2) + 1e-12)
        assert rel < 3e-2, float(rel)

    print("KERNEL_OK")
</pallas_src>

<mosaic_0001>
module attributes {stable_mosaic.version = 11 : i64} {
  func.func @_pool_kernel(%arg0: i32, %arg1: i32, %arg2: memref<1x4x128xbf16, #tpu.memory_space<vmem>>, %arg3: memref<128x110xbf16, #tpu.memory_space<vmem>>, %arg4: memref<32x4xbf16, #tpu.memory_space<vmem>>, %arg5: memref<32x1xf32, #tpu.memory_space<vmem>>, %arg6: memref<4x16xf32, #tpu.memory_space<vmem>>, %arg7: memref<1x16x128xbf16, #tpu.memory_space<vmem>>, %arg8: memref<1x16x110xf32, #tpu.memory_space<vmem>>, %arg9: memref<1x4x110xf32, #tpu.memory_space<vmem>>, %arg10: memref<16x110xf32, #tpu.memory_space<vmem>>, %arg11: memref<16x110xf32, #tpu.memory_space<vmem>>) attributes {dimension_semantics = [#tpu.dimension_semantics<parallel>, #tpu.dimension_semantics<arbitrary>], iteration_bounds = array<i64: 2, 2>, scalar_prefetch = 0 : i64, scratch_operands = 2 : i64, tpu.core_type = #tpu.core_type<tc>, window_params = [{transform_indices = @transform_0, window_bounds = array<i64: 1, 4, 128>}, {transform_indices = @transform_1, window_bounds = array<i64: 128, 110>}, {pipeline_mode = #tpu.pipeline_mode<synchronous>, transform_indices = @transform_2, window_bounds = array<i64: 32, 4>}, {pipeline_mode = #tpu.pipeline_mode<synchronous>, transform_indices = @transform_3, window_bounds = array<i64: 32, 1>}, {pipeline_mode = #tpu.pipeline_mode<synchronous>, transform_indices = @transform_4, window_bounds = array<i64: 4, 16>}, {transform_indices = @transform_5, window_bounds = array<i64: 1, 16, 128>}, {transform_indices = @transform_6, window_bounds = array<i64: 1, 16, 110>}, {transform_indices = @transform_7, window_bounds = array<i64: 1, 4, 110>}]} {
    %c0_i32 = arith.constant 0 : i32
    %0 = arith.cmpi eq, %arg1, %c0_i32 : i32
    %1 = arith.extui %0 : i1 to i32
    %c0_i32_0 = arith.constant 0 : i32
    %2 = arith.cmpi ne, %1, %c0_i32_0 : i32
    scf.if %2 {
      %cst_24 = arith.constant 0.000000e+00 : f32
      %31 = vector.broadcast %cst_24 : f32 to vector<16x110xf32>
      %c0_25 = arith.constant 0 : index
      %c0_26 = arith.constant 0 : index
      %32 = vector.load %arg10[%c0_25, %c0_26] : memref<16x110xf32, #tpu.memory_space<vmem>>, vector<16x110xf32>
      tpu.vector_store %arg10[%c0_25, %c0_26], %31 {strides = array<i32>} : memref<16x110xf32, #tpu.memory_space<vmem>>, vector<16x110xf32>,
      %cst_27 = arith.constant 0.000000e+00 : f32
      %33 = vector.broadcast %cst_27 : f32 to vector<16x110xf32>
      %c0_28 = arith.constant 0 : index
      %c0_29 = arith.constant 0 : index
      %34 = vector.load %arg11[%c0_28, %c0_29] : memref<16x110xf32, #tpu.memory_space<vmem>>, vector<16x110xf32>
      tpu.vector_store %arg11[%c0_28, %c0_29], %33 {strides = array<i32>} : memref<16x110xf32, #tpu.memory_space<vmem>>, vector<16x110xf32>,
    } else {
    }
    %c0 = arith.constant 0 : index
    %c0_1 = arith.constant 0 : index
    %c0_2 = arith.constant 0 : index
    %3 = vector.load %arg2[%c0, %c0_1, %c0_2] : memref<1x4x128xbf16, #tpu.memory_space<vmem>>, vector<1x4x128xbf16>
    %4 = vector.shape_cast %3 : vector<1x4x128xbf16> to vector<4x128xbf16>
    %c0_3 = arith.constant 0 : index
    %c0_4 = arith.constant 0 : index
    %5 = vector.load %arg3[%c0_3, %c0_4] : memref<128x110xbf16, #tpu.memory_space<vmem>>, vector<128x110xbf16>
    %c0_5 = arith.constant 0 : index
    %c0_6 = arith.constant 0 : index
    %6 = vector.load %arg4[%c0_5, %c0_6] : memref<32x4xbf16, #tpu.memory_space<vmem>>, vector<32x4xbf16>
    %cst = arith.constant dense<0.000000e+00> : vector<32x128xf32>
    %7 = tpu.matmul %6, %4, %cst {dimension_numbers = #tpu.dot_dimension_numbers<[1], [0], [0], [1], [0, 0, 1, 1], [], []>} : vector<32x4xbf16>, vector<4x128xbf16>, vector<32x128xf32> -> vector<32x128xf32>
    %c0_7 = arith.constant 0 : index
    %c0_8 = arith.constant 0 : index
    %8 = vector.load %arg5[%c0_7, %c0_8] : memref<32x1xf32, #tpu.memory_space<vmem>>, vector<32x1xf32>
    %9 = vector.broadcast %8 : vector<32x1xf32> to vector<32x128xf32>
    %10 = arith.addf %7, %9 : vector<32x128xf32>
    %11 = vector.extract_strided_slice %10 {offsets = [0, 0], sizes = [16, 128], strides = [1, 1]} : vector<32x128xf32> to vector<16x128xf32>
    %cst_9 = arith.constant 0.000000e+00 : f32
    %12 = vector.broadcast %cst_9 : f32 to vector<16x128xf32>
    %13 = arith.maximumf %11, %12 : vector<16x128xf32>
    %14 = vector.extract_strided_slice %10 {offsets = [16, 0], sizes = [16, 128], strides = [1, 1]} : vector<32x128xf32> to vector<16x128xf32>
    %15 = arith.truncf %13 : vector<16x128xf32> to vector<16x128xbf16>
    %c0_10 = arith.constant 0 : index
    %c0_11 = arith.constant 0 : index
    %c0_12 = arith.constant 0 : index
    %16 = vector.load %arg7[%c0_10, %c0_11, %c0_12] : memref<1x16x128xbf16, #tpu.memory_space<vmem>>, vector<1x16x128xbf16>
    %17 = vector.shape_cast %16 : vector<1x16x128xbf16> to vector<16x128xbf16>
    %18 = vector.shape_cast %15 : vector<16x128xbf16> to vector<1x16x128xbf16>
    tpu.vector_store %arg7[%c0_10, %c0_11, %c0_12], %18 {strides = array<i32>} : memref<1x16x128xbf16, #tpu.memory_space<vmem>>, vector<1x16x128xbf16>,
    %c0_13 = arith.constant 0 : index
    %c0_14 = arith.constant 0 : index
    %19 = vector.load %arg10[%c0_13, %c0_14] : memref<16x110xf32, #tpu.memory_space<vmem>>, vector<16x110xf32>
    %cst_15 = arith.constant dense<0.000000e+00> : vector<16x110xf32>
    %20 = tpu.matmul %15, %5, %cst_15 {dimension_numbers = #tpu.dot_dimension_numbers<[1], [0], [0], [1], [0, 0, 1, 1], [], []>} : vector<16x128xbf16>, vector<128x110xbf16>, vector<16x110xf32> -> vector<16x110xf32>
    %21 = arith.addf %19, %20 : vector<16x110xf32>
    %c0_16 = arith.constant 0 : index
    %c0_17 = arith.constant 0 : index
    %22 = vector.load %arg10[%c0_16, %c0_17] : memref<16x110xf32, #tpu.memory_space<vmem>>, vector<16x110xf32>
    tpu.vector_store %arg10[%c0_16, %c0_17], %21 {strides = array<i32>} : memref<16x110xf32, #tpu.memory_space<vmem>>, vector<16x110xf32>,
    %c0_18 = arith.constant 0 : index
    %c0_19 = arith.constant 0 : index
    %23 = vector.load %arg11[%c0_18, %c0_19] : memref<16x110xf32, #tpu.memory_space<vmem>>, vector<16x110xf32>
    %24 = arith.truncf %14 : vector<16x128xf32> to vector<16x128xbf16>
    %cst_20 = arith.constant dense<0.000000e+00> : vector<16x110xf32>
    %25 = tpu.matmul %24, %5, %cst_20 {dimension_numbers = #tpu.dot_dimension_numbers<[1], [0], [0], [1], [0, 0, 1, 1], [], []>} : vector<16x128xbf16>, vector<128x110xbf16>, vector<16x110xf32> -> vector<16x110xf32>
    %26 = arith.addf %23, %25 : vector<16x110xf32>
    %c0_21 = arith.constant 0 : index
    %c0_22 = arith.constant 0 : index
    %27 = vector.load %arg11[%c0_21, %c0_22] : memref<16x110xf32, #tpu.memory_space<vmem>>, vector<16x110xf32>
    tpu.vector_store %arg11[%c0_21, %c0_22], %26 {strides = array<i32>} : memref<16x110xf32, #tpu.memory_space<vmem>>, vector<16x110xf32>,
    %c1_i32 = arith.constant 1 : i32
    %28 = arith.cmpi eq, %arg1, %c1_i32 : i32
    %29 = arith.extui %28 : i1 to i32
    %c0_i32_23 = arith.constant 0 : i32
    %30 = arith.cmpi ne, %29, %c0_i32_23 : i32
    scf.if %30 {
      %c0_24 = arith.constant 0 : index
      %c0_25 = arith.constant 0 : index
      %31 = vector.load %arg10[%c0_24, %c0_25] : memref<16x110xf32, #tpu.memory_space<vmem>>, vector<16x110xf32>
      %c0_26 = arith.constant 0 : index
      %c0_27 = arith.constant 0 : index
      %c0_28 = arith.constant 0 : index
      %32 = vector.load %arg8[%c0_26, %c0_27, %c0_28] : memref<1x16x110xf32, #tpu.memory_space<vmem>>, vector<1x16x110xf32>
      %33 = vector.shape_cast %32 : vector<1x16x110xf32> to vector<16x110xf32>
      %34 = vector.shape_cast %31 : vector<16x110xf32> to vector<1x16x110xf32>
      tpu.vector_store %arg8[%c0_26, %c0_27, %c0_28], %34 {strides = array<i32>} : memref<1x16x110xf32, #tpu.memory_space<vmem>>, vector<1x16x110xf32>,
      %c0_29 = arith.constant 0 : index
      %c0_30 = arith.constant 0 : index
      %35 = vector.load %arg6[%c0_29, %c0_30] : memref<4x16xf32, #tpu.memory_space<vmem>>, vector<4x16xf32>
      %c0_31 = arith.constant 0 : index
      %c0_32 = arith.constant 0 : index
      %36 = vector.load %arg11[%c0_31, %c0_32] : memref<16x110xf32, #tpu.memory_space<vmem>>, vector<16x110xf32>
      %cst_33 = arith.constant dense<0.000000e+00> : vector<4x110xf32>
      %37 = tpu.matmul %35, %36, %cst_33 {dimension_numbers = #tpu.dot_dimension_numbers<[1], [0], [0], [1], [0, 0, 1, 1], [], []>} : vector<4x16xf32>, vector<16x110xf32>, vector<4x110xf32> -> vector<4x110xf32>
      %c0_34 = arith.constant 0 : index
      %c0_35 = arith.constant 0 : index
      %c0_36 = arith.constant 0 : index
      %38 = vector.load %arg9[%c0_34, %c0_35, %c0_36] : memref<1x4x110xf32, #tpu.memory_space<vmem>>, vector<1x4x110xf32>
      %39 = vector.shape_cast %38 : vector<1x4x110xf32> to vector<4x110xf32>
      %40 = vector.shape_cast %37 : vector<4x110xf32> to vector<1x4x110xf32>
      tpu.vector_store %arg9[%c0_34, %c0_35, %c0_36], %40 {strides = array<i32>} : memref<1x4x110xf32, #tpu.memory_space<vmem>>, vector<1x4x110xf32>,
    } else {
    }
    return
  }
  func.func @transform_0(%arg0: i32, %arg1: i32) -> (i32, i32, i32) {
    %c0_i32 = arith.constant 0 : i32
    %c0_i32_0 = arith.constant 0 : i32
    return %arg0, %c0_i32, %arg1 : i32, i32, i32
  }
  func.func @transform_1(%arg0: i32, %arg1: i32) -> (i32, i32) {
    %c0_i32 = arith.constant 0 : i32
    %c0_i32_0 = arith.constant 0 : i32
    return %arg1, %c0_i32 : i32, i32
  }
  func.func @transform_2(%arg0: i32, %arg1: i32) -> (i32, i32) {
    %c0_i32 = arith.constant 0 : i32
    %c0_i32_0 = arith.constant 0 : i32
    %c0_i32_1 = arith.constant 0 : i32
    return %c0_i32, %c0_i32_0 : i32, i32
  }
  func.func @transform_3(%arg0: i32, %arg1: i32) -> (i32, i32) {
    %c0_i32 = arith.constant 0 : i32
    %c0_i32_0 = arith.constant 0 : i32
    %c0_i32_1 = arith.constant 0 : i32
    return %c0_i32, %c0_i32_0 : i32, i32
  }
  func.func @transform_4(%arg0: i32, %arg1: i32) -> (i32, i32) {
    %c0_i32 = arith.constant 0 : i32
    %c0_i32_0 = arith.constant 0 : i32
    %c0_i32_1 = arith.constant 0 : i32
    return %c0_i32, %c0_i32_0 : i32, i32
  }
  func.func @transform_5(%arg0: i32, %arg1: i32) -> (i32, i32, i32) {
    %c0_i32 = arith.constant 0 : i32
    %c0_i32_0 = arith.constant 0 : i32
    return %arg0, %c0_i32, %arg1 : i32, i32, i32
  }
  func.func @transform_6(%arg0: i32, %arg1: i32) -> (i32, i32, i32) {
    %c0_i32 = arith.constant 0 : i32
    %c0_i32_0 = arith.constant 0 : i32
    %c0_i32_1 = arith.constant 0 : i32
    return %arg0, %c0_i32, %c0_i32_0 : i32, i32, i32
  }
  func.func @transform_7(%arg0: i32, %arg1: i32) -> (i32, i32, i32) {
    %c0_i32 = arith.constant 0 : i32
    %c0_i32_0 = arith.constant 0 : i32
    %c0_i32_1 = arith.constant 0 : i32
    return %arg0, %c0_i32, %c0_i32_0 : i32, i32, i32
  }
}

</mosaic_0001>

<bundles_post_ra>
// kernel: tpu_custom_call.1
= control target key start
LH: loop header
LB: loop body
LE: loop exit
PB: predicated region body
PF: predicated region fallthrough
CT: control target
= control target key end

     0   :  { %s1725_s0 = inlined_call_operand.vmem [shape: bf16[2,4,256], index: 0, kind: input, shape index: {}]   ;;  %s1726_s1 = inlined_call_operand.vmem [shape: bf16[256,110], index: 1, kind: input, shape index: {}]   ;;  %s1727_s2 = inlined_call_operand.vmem [shape: bf16[32,4], index: 2, kind: input, shape index: {}]   ;;  %s1728_s3 = inlined_call_operand.vmem [shape: f32[32,1], index: 3, kind: input, shape index: {}]   ;;  %s1729_s4 = inlined_call_operand.vmem [shape: f32[4,16], index: 4, kind: input, shape index: {}]   ;;  %s1730_s5 = inlined_call_operand.hbm [shape: bf16[2,16,256], index: 5, kind: output, shape index: {0}]   ;;  %s1731_s6 = inlined_call_operand.hbm [shape: f32[2,16,110], index: 6, kind: output, shape index: {1}]   ;;  %s1732_s7 = inlined_call_operand.hbm [shape: f32[2,4,110], index: 7, kind: output, shape index: {2}]  }
   0x1   :  { %1749 = sst [smem:[#allocation23_spill]] %s1725_s0 }
   0x2   :  { %1750 = sst [smem:[#allocation24_spill]] %s1726_s1 }
   0x3   :  { %1751 = sst [smem:[#allocation25_spill]] %s1730_s5 }
   0x4   :  { %1752 = sst [smem:[#allocation26_spill]] %s1732_s7 }
   0x5   :  { %13 = vsyncpa [#allocation5], 0 }
   0x6   :  { %15 = vsyncpa [#allocation5 + $0x1], 0 }
   0x7   :  { %16 = vsyncpa [#allocation7], 0 }
   0x8   :  { %18 = vsyncpa [#allocation7 + $0x1], 0  ;;  %s1397_s24 = smov 0   ;;  %s1399_s25 = smov 0  }
   0x9   :  { %s1401_s26 = smov 0   ;;  %s1403_s27 = smov 0  }
   0xa   :  { %s1405_s28 = smov 0   ;;  %s1407_s29 = smov 0  }
   0xb   :  { %s1409_s30 = smov 0   ;;  %s1411_s8 = smov 0  }
   0xc   :  { %s1413_s9 = smov 0   ;;  %s1415_s10 = smov 0  }
   0xd   :  { %s1417_s11 = smov 0  }
   0xe LB: > { %1753 = sst [smem:[#allocation11_spill]] %s1306_s25  ;;  %s1733_s12 = sadd.s32 4294967295, %s1342_s11   ;;  %s1342_s11 = sphi %s1417_s11, %s24_s11   ;;  %s1338_s10 = sphi %s1415_s10, %s1793_s10   ;;  %s1334_s9 = sphi %s1413_s9, %s1792_s9   ;;  %s1330_s8 = sphi %s1411_s8, %s1791_s8   ;;  %s1326_s30 = sphi %s1409_s30, %s1790_s30   ;;  %s1322_s29 = sphi %s1407_s29, %s1789_s29   ;;  %s1318_s28 = sphi %s1405_s28, %s1795_s28   ;;  %s1314_s27 = sphi %s1403_s27, %s1794_s27   ;;  %s1310_s26 = sphi %s1401_s26, %s1787_s26   ;;  %s1306_s25 = sphi %s1399_s25, %s1786_s25   ;;  %s1302_s24 = sphi %s1397_s24, %s1785_s24  }
   0xf   : > { %1754 = sst [smem:[#allocation12_spill]] %s1310_s26  ;;  %s1734_s13 = sadd.s32 4294967294, %s1342_s11  }
  0x10   : > { %1755 = sst [smem:[#allocation13_spill]] %s1314_s27  ;;  %s33_s14 = sadd.s32 1, %s1334_s9 }
  0x11   : > { %1756 = sst [smem:[#allocation14_spill]] %s1322_s29  ;;  %s36_s15 = sadd.s32 1, %s1338_s10 }
  0x12   : > { %1757 = sst [smem:[#allocation15_spill]] %s1334_s9  ;;  %p34_p0 = scmp.ge.s32.totalorder %s33_s14, 2 }
  0x13   : > { %1758 = sst [smem:[#allocation16_spill]] %s1338_s10  ;;  %s162_s16 = sadd.s32 1, %s1322_s29 }
  0x14   : > { %p172_p1 = scmp.ne.s32.totalorder %s1322_s29, %s1318_s28  ;;  %p1461_p2 = scmp.eq.s32.totalorder %s1733_s12, 3 }
  0x15   : > { %s1797_s14 = smov (%p34_p0, %s33_s14), 0  ;;  %s1799_s15 = smov (!%p34_p0, %s36_s15), %s1338_s10 }
  0x16   : > { %1760 = sst [smem:[#allocation17_spill]] %s1797_s14  ;;  %s158_s18 = ssub.s32 %s1334_s9, %s1797_s14 }
  0x17   : > { %p1472_p3 = por %p1461_p2, %p172_p1  ;;  %p38_p4 = scmp.ge.s32.totalorder %s1799_s15, 2 }
  0x18   : > { %p178_p5 = scmp.ne.s32.totalorder %s1318_s28, %s1314_s27  ;;  %p1480_p6 = scmp.eq.s32.totalorder %s1734_s13, 3 }
  0x19   : > { %s188_s21 = sadd.s32 1, %s1310_s26  ;;  %s1801_s15 = smov (%p38_p4, %s1799_s15), 0 }
  0x1a   : > { %1763 = sst [smem:[#allocation18_spill]] %s1801_s15  ;;  %p1489_p7 = por %p1480_p6, %p178_p5 }
  0x1b   : > { %p198_p8 = scmp.ne.s32.totalorder %s1310_s26, %s1306_s25  ;;  %s157_s23 = ssub.s32 %s1338_s10, %s1801_s15 }
  0x1c   : > { %s1764_s22 = scalar_select %p1489_p7, 1, 0 }
  0x1d   : > { %p204_p9 = scmp.ne.s32.totalorder %s1306_s25, %s1302_s24  ;;  %s159_s12 = sor.u32 %s158_s18, %s157_s23 }
  0x1e   : > { %1765 = sst [smem:[#allocation19_spill]] %s1764_s22  ;;  %p186_p10 = scmp.eq.s32.totalorder %s157_s23, 0 }
  0x1f   : > { %p160_p11 = scmp.eq.s32.totalorder %s159_s12, 0  ;;  %p1501_p12 = por %p198_p8, %p1461_p2 }
  0x20   : > { %s1506_s14 = scalar_select %p186_p10, %s1310_s26, %s188_s21  }
  0x21   : > { %s1509_s9 = scalar_select %p160_p11, %s1322_s29, %s162_s16  }
  0x22   : > { %1767 = sst [smem:[#allocation20_spill]] %s1506_s14  ;;  %p1513_p13 = por %p204_p9, %p1480_p6 }
  0x23   : > { %1768 = sst [smem:[#allocation21_spill]] %s1509_s9  ;;  %p922_p0 = scmp.ge.s32.totalorder %s1342_s11, 1 }
  0x24   : > { %s1769_s27 = scalar_select %p1513_p13, 1, 0 }
  0x25   : > { %p278_p1 = scmp.lt.s32.totalorder %s1342_s11, 5 }
  0x26   : > { %1770 = sst [smem:[#allocation22_spill]] %s1769_s27 }
  0x27   : > { %p279_p4 = pnand %p922_p0, %p278_p1 }
  0x28   : > { %s1742_s24 = sand.u32 (!%p279_p4), 1, %s1318_s28   ;;  %s318_s12 = sand.u32 (!%p279_p4), 1, %s1306_s25  }
  0x29   : > { %282 = sbr.rel (%p279_p4) target bundleno = 750 (0x2ee), region = 40  ;;  %s1523_s16 = sshll.u32 (!%p279_p4), %s1742_s24, 3 }
  0x2a   : > { %s924_s17 = sshll.u32 (!%p279_p4), %s318_s12, 4  ;;  %s1525_s18 = sshll.u32 (!%p279_p4), %s318_s12, 2 }
  0x2b   : > { %p328_p2 = scmp.lt.s32.totalorder (!%p279_p4), %s1330_s8, 1  ;;  %p330_p5 = scmp.lt.s32.totalorder (!%p279_p4), %s1326_s30, 1 }
  0x2c   : > { %s928_s15 = sshll.u32 (!%p279_p4), %s1326_s30, 4  ;;  %s1771_s0 = sld [smem:[#allocation23_spill]] (!%p279_p4) }
  0x2d   : > { %p337_p6 = scmp.lt.s32.totalorder (!%p279_p4), %s928_s15, 31  ;;  %s1772_s1 = sld [smem:[#allocation24_spill]] (!%p279_p4) }
  0x2e   : > { %s329_s20 = scalar_select %p328_p2, %s1330_s8, 1 }
  0x2f   : > { %s331_s21 = scalar_select %p330_p5, %s1326_s30, 1 }
  0x30   : > { %s926_s23 = sshll.u32 %s329_s20, 1  ;;  %s1803_s15 = smov (!%p337_p6, %s928_s15), 31 }
  0x31   : > { %s333_s10 = sadd.s32 %s926_s23, %s331_s21  ;;  %s929_s24 = sshll.u32 %s1803_s15, 2 }
  0x32   : > { %s927_s9 = sshll.u32 %s333_s10, 1  ;;  %s313_s22 = scalar_lea.vmem [#allocation4], %s1523_s16 }
  0x33   : > { %s335_s26 = scalar_lea.vmem %s1771_s0, %s927_s9  ;;  %s1538_s12 = scalar_lea.vmem %s1772_s1, %s929_s24 }
  0x34   : > { %s1541_s7 = scalar_lea.vmem [#allocation6], %s924_s17  ;;  %s1748_s5 = scalar_lea.vmem [#allocation8], %s1525_s18 }
  0x35   : > { %p930_p8 = scmp.ne.s32.totalorder %s1326_s30, 0 }
  0x37   : > { %346 = sbr.rel (%p930_p8) target bundleno = 63 (0x3f), region = 44 }
  0x3c   : > { %vm347_vm0 = vcmask 900096   ;;  %v1344_v0 = vmov 0.0  }
  0x3d   : > { %348 = vst.msk [vmem:[#allocation2] sm:$0xff] %vm347_vm0, %v1344_v0  ;;  %349 = vst.msk [vmem:[#allocation2 + $0x8] sm:$0xff] %vm347_vm0, %v1344_v0 }
  0x3e   : > { %350 = vst.msk [vmem:[#allocation3] sm:$0xff] %vm347_vm0, %v1344_v0  ;;  %351 = vst.msk [vmem:[#allocation3 + $0x8] sm:$0xff] %vm347_vm0, %v1344_v0 }
  0x3f PF: > { %v352_v1 = vld [vmem:[%s335_s26] sm:$0x3]  ;;  %vm414_vm1 = vcmask 1041408   ;;  %vm407_vm2 = vcmask 31744   ;;  %v1161_v4 = vld [vmem:[%s1727_s2 + $0x8] sm:$0xff]   ;;  %v1345_v6 = vmov 0  }
  0x40   : > { %v1160_v2 = vld [vmem:[%s1727_s2] sm:$0xff]   ;;  %1042 = vmatprep.subr.msk.bf16.mxu0 %vm414_vm1, %v352_v1  ;;  %v416_v3 = vsel %vm414_vm1, %v352_v1, 0  ;;  %1158 = vset.pattern.permute.xlu0 %v1345_v6  ;;  %v375_v7 = vld [vmem:[%s1728_s3 + $0x10] sm:$0xff]  ;;  %v374_v8 = vld [vmem:[%s1728_s3 + $0x8] sm:$0xff]  ;;  %v1346_v11 = vmov 0.0   ;;  %vm1347_vm3 = vmmov 0  }
  0x41   : > { %990 = vmatpush3.bf16.msra.mxu0 %v416_v3  ;;  %991 = vmatprep.mubr.msk.bf16.mxu0 %vm407_vm2, %v1160_v2  ;;  %v373_v5 = vld [vmem:[%s1728_s3] sm:$0xff]  ;;  %v1162_v9 = vld [vmem:[%s1538_s12 + $0x38] sm:$0xff]   ;;  %v1163_v12 = vld [vmem:[%s1538_s12 + $0x30] sm:$0xff]   ;;  %vm572_vm4 = vcmask 900096   ;;  %p945_p9 = scmp.ne.s32.totalorder %s1326_s30, 1 }
  0x42   : > { %1159 = vset.pattern.permute.xlu1 %v1345_v6  ;;  %379 = vperm.xlu0 %1158, %v373_v5   ;;  %v376_v10 = vld [vmem:[%s1728_s3 + $0x18] sm:$0xff]  ;;  %v1164_v13 = vld [vmem:[%s1538_s12 + $0x28] sm:$0xff]   ;;  %v1165_v14 = vld [vmem:[%s1538_s12 + $0x20] sm:$0xff]  }
  0x43   : > { %389 = vperm.xlu1 %1159, %v375_v7   ;;  %1015 = vmatprep.subr.bf16.mxu0 %v1346_v11  ;;  %v1166_v15 = vld [vmem:[%s1538_s12 + $0x18] sm:$0xff]   ;;  %v1167_v16 = vld [vmem:[%s1538_s12 + $0x10] sm:$0xff]   ;;  %v1168_v17 = vld [vmem:[%s1538_s12 + $0x8] sm:$0xff]  }
  0x44   : > { %992 = vmatmul.mubr.msk.bf16.vlgmr.msra.gmra.mxu0 %vm407_vm2, %v1161_v4  ;;  %995 = vmatprep.subr.bf16.mxu1 %v1346_v11  ;;  %v1169_v18 = vld [vmem:[%s1538_s12] sm:$0xff]   ;;  %v480_v47 = vld [vmem:[#allocation2 + $0x8] sm:$0xff] }
  0x45   : > { %1016 = vmatpush3.bf16.msra.mxu0 %v1162_v9  ;;  %996 = vmatpush3.bf16.msra.mxu1 %v1162_v9  ;;  %v575_v35 = vld [vmem:[#allocation3] sm:$0xff]  ;;  %v479_v39 = vld [vmem:[#allocation2] sm:$0xff]  ;;  %v576_v40 = vld [vmem:[#allocation3 + $0x8] sm:$0xff] }
  0x46   : > { %1017 = vmatprep.subr.bf16.mxu0 %v1346_v11  ;;  %384 = vperm.xlu0 %1158, %v374_v8  }
  0x47   : > { %394 = vperm.xlu1 %1159, %v376_v10   ;;  %997 = vmatprep.subr.bf16.mxu1 %v1346_v11 }
  0x48   : > { %1031 = vmatprep.mubr.msk.bf16.mxu0 %vm1347_vm3, %v1346_v11  ;;  %1011 = vmatprep.mubr.msk.bf16.mxu1 %vm1347_vm3, %v1346_v11 }
  0x49   : > { %1018 = vmatpush3.bf16.msra.mxu0 %v1163_v12  ;;  %998 = vmatpush3.bf16.msra.mxu1 %v1163_v12 }
  0x4a   : > { %1019 = vmatprep.subr.bf16.mxu0 %v1346_v11  ;;  %999 = vmatprep.subr.bf16.mxu1 %v1346_v11 }
  0x4d   : > { %1020 = vmatpush3.bf16.msra.mxu0 %v1164_v13  ;;  %1000 = vmatpush3.bf16.msra.mxu1 %v1164_v13 }
  0x4e   : > { %1021 = vmatprep.subr.bf16.mxu0 %v1346_v11  ;;  %1001 = vmatprep.subr.bf16.mxu1 %v1346_v11 }
  0x51   : > { %1022 = vmatpush3.bf16.msra.mxu0 %v1165_v14  ;;  %1002 = vmatpush3.bf16.msra.mxu1 %v1165_v14 }
  0x52   : > { %1023 = vmatprep.subr.bf16.mxu0 %v1346_v11  ;;  %1003 = vmatprep.subr.bf16.mxu1 %v1346_v11 }
  0x55   : > { %1024 = vmatpush3.bf16.msra.mxu0 %v1166_v15  ;;  %1004 = vmatpush3.bf16.msra.mxu1 %v1166_v15 }
  0x56   : > { %1025 = vmatprep.subr.bf16.mxu0 %v1346_v11  ;;  %1005 = vmatprep.subr.bf16.mxu1 %v1346_v11 }
  0x59   : > { %1026 = vmatpush3.bf16.msra.mxu0 %v1167_v16  ;;  %1006 = vmatpush3.bf16.msra.mxu1 %v1167_v16 }
  0x5a   : > { %1027 = vmatprep.subr.bf16.mxu0 %v1346_v11  ;;  %1007 = vmatprep.subr.bf16.mxu1 %v1346_v11 }
  0x5d   : > { %1028 = vmatpush3.bf16.msra.mxu0 %v1168_v17  ;;  %1008 = vmatpush3.bf16.msra.mxu1 %v1168_v17 }
  0x5e   : > { %1029 = vmatprep.subr.bf16.mxu0 %v1346_v11  ;;  %1009 = vmatprep.subr.bf16.mxu1 %v1346_v11 }
  0x61   : > { %1030 = vmatpush3.bf16.msra.mxu0 %v1169_v18  ;;  %1010 = vmatpush3.bf16.msra.mxu1 %v1169_v18 }
  0xbd   : > { %v380_v20 = vpop.permute.xlu0 %379 }
  0xbe   : > { %v390_v19 = vpop.permute.xlu1 %389 }
  0xc1   : > { %v385_v28 = vpop.permute.xlu0 %384 }
  0xc2   : > { %v395_v23 = vpop.permute.xlu1 %394 }
 0x104   : > { %v993_v21 = vpop.f32.mrf.mxu0 }
 0x105   : > { %v461_v25 = vadd.f32 %v993_v21, %v390_v19 }
 0x106   : > { %v452_v22 = vpop.f32.mrf.mxu0 }
 0x107   : > { %v453_v26 = vadd.f32 %v452_v22, %v380_v20 }
 0x108   : > { %v994_v24 = vpop.f32.mrf.mxu0 }
 0x109   : > { %v464_v27 = vadd.f32 %v994_v24, %v395_v23  ;;  %v467_v32 = vmax.f32 %v453_v26, 0.0 }
 0x10a   : > { %v455_v29 = vpop.f32.mrf.mxu0 }
 0x10b   : > { %v577_v30 = vpack.c.bf16 %v464_v27, %v461_v25  ;;  %v456_v31 = vadd.f32 %v455_v29, %v385_v28 }
 0x10d   : > { %v468_v33 = vmax.f32 %v456_v31, 0.0  ;;  %1032 = vmatmul.mubr.bf16.vlgmr.msra.gmra.mxu0 %v577_v30 }
 0x10f   : > { %v469_v34 = vpack.c.bf16 %v468_v33, %v467_v32 }
 0x111   : > { %964 = vst [vmem:[%s313_s22] sm:$0xff] %v469_v34   ;;  %1012 = vmatmul.mubr.bf16.vlgmr.msra.gmra.mxu1 %v469_v34 }
 0x1cd   : > { %v612_v36 = vpop.f32.mrf.mxu0 }
 0x1ce   : > { %v619_v37 = vadd.f32 %v612_v36, %v575_v35 }
 0x1cf   : > { %v1033_v38 = vpop.f32.mrf.mxu0 }
 0x1d0   : > { %621 = vst.msk [vmem:[#allocation3] sm:$0xff] %vm572_vm4, %v619_v37 }
 0x1d1   : > { %v563_v41 = vpop.f32.mrf.mxu1  ;;  %v615_v42 = vpop.f32.mrf.mxu0 }
 0x1d2   : > { %v570_v43 = vadd.f32 %v563_v41, %v479_v39  ;;  %v620_v44 = vadd.f32 %v615_v42, %v576_v40 }
 0x1d3   : > { %v1013_v45 = vpop.f32.mrf.mxu1  ;;  %v1034_v46 = vpop.f32.mrf.mxu0 }
 0x1d4   : > { %573 = vst.msk [vmem:[#allocation2] sm:$0xff] %vm572_vm4, %v570_v43  ;;  %622 = vst.msk [vmem:[#allocation3 + $0x8] sm:$0xff] %vm572_vm4, %v620_v44  ;;  %626 = sbr.rel (%p945_p9) target bundleno = 674 (0x2a2), region = 48 }
 0x1d5   : > { %v566_v48 = vpop.f32.mrf.mxu1 }
 0x1d6   : > { %v571_v49 = vadd.f32 %v566_v48, %v480_v47 }
 0x1d7   : > { %v1014_v50 = vpop.f32.mrf.mxu1 }
 0x1d8   : > { %574 = vst.msk [vmem:[#allocation2 + $0x8] sm:$0xff] %vm572_vm4, %v571_v49 }
 0x1d9   : > { %v1348_v54 = vmov 0.0   ;;  %v632_v55 = vld [vmem:[#allocation3] sm:$0xff]  ;;  %vm1349_vm5 = vmmov 0   ;;  %v631_v56 = vld [vmem:[%s1729_s4] sm:$0xf]  ;;  %vm634_vm6 = vcmask 130048  }
 0x1da   : > { %1035 = vmatprep.subr.mxu0 %v1348_v54  ;;  %1039 = vmatprep.mubr.msk.f32.mxu0 %vm1349_vm5, %v1348_v54  ;;  %vm708_vm7 = vcmask 896000  }
 0x1db   : > { %v627_v51 = vld [vmem:[#allocation2] sm:$0xff]  ;;  %v633_v53 = vld [vmem:[#allocation3 + $0x8] sm:$0xff] }
 0x1dc   : > { %629 = vst.msk [vmem:[%s1541_s7] sm:$0xff] %vm572_vm4, %v627_v51  ;;  %1036 = vmatpush3.msra.mxu0 %v633_v53 }
 0x1dd   : > { %1037 = vmatprep.subr.mxu0 %v1348_v54 }
 0x1de   : > { %1038 = vmatpush3.msra.mxu0 %v632_v55 }
 0x1df   : > { %v628_v52 = vld [vmem:[#allocation2 + $0x8] sm:$0xff]  ;;  %1040 = vmatmul.mubr.msk.f32.vlgmr.msra.gmra.mxu0 %vm634_vm6, %v631_v56 }
 0x1e0   : > { %630 = vst.msk [vmem:[%s1541_s7 + $0x8] sm:$0xff] %vm572_vm4, %v628_v52 }
 0x29f   : > { %v704_v57 = vpop.f32.mrf.mxu0 }
 0x2a0   : > { %709 = vst.msk [vmem:[%s1748_s5] sm:$0xf] %vm708_vm7, %v704_v57 }
 0x2a1   : > { %v1041_v58 = vpop.f32.mrf.mxu0 }
 0x2a2 PF: > { %s1773_s29 = sadd.s32 4294967295, %s1342_s11   ;;  %s959_s27 = sshll.u32 %s1330_s8, 8 }
 0x2a3   : > { %s1589_s25 = sand.u32 1, %s1773_s29   ;;  %s1595_s14 = scalar_lea.hbm %s1731_s6, %s959_s27 }
 0x2a4   : > { %s751_s26 = sshll.u32 %s1541_s7, 4  ;;  %s716_s15 = scalar_lea.sflag [#allocation7], %s1589_s25  ;;  %s1598_s26 = int_to_ptr.vmem [resolvable:$true] %s751_s26 }
 0x2a5   : > { %s1170_s24 = scalar_lea.vmem %s1598_s26, 256  ;;  %s1350_s17 = smov [#allocation6]  }
 0x2a6   : > { %p1171_p10 = scmp.ne.s32.totalorder %s1598_s26, %s1170_s24  ;;  %s1174_s20 = sshll.u32 %s1350_s17, 4  ;;  %s1175_s20 = int_to_ptr.vmem [resolvable:$false] %s1174_s20 }
 0x2a7   : > { %s1176_s21 = scalar_lea.vmem %s1175_s20, 512  ;;  %p1177_p1 = scmp.lt.s32.totalorder %s1598_s26, %s1175_s20 }
 0x2a8   : > { %p1172_p11 = pnand %p1171_p10, %p1501_p12  ;;  %p1178_p4 = scmp.lt.s32.totalorder %s1176_s21, %s1170_s24 }
 0x2aa   : > { %p1173_p0 = pneg %p1172_p11  ;;  %p1179_p2 = por %p1178_p4, %p1177_p1 }
 0x2ac   : > { %p1180_p5 = pnand %p1179_p2, %p1173_p0 }
 0x2ae   : > { %1183 = shalt.err (!%p1180_p5)
}
 0x2af   : > { %s1184_s7 = scalar_lea.hbm %s1595_s14, 256  ;;  %s1188_s29 = scalar_lea.hbm %s1731_s6, 512 }
 0x2b0   : > { %p1185_p6 = scmp.ne.s32.totalorder %s1595_s14, %s1184_s7  ;;  %p1189_p10 = scmp.lt.s32.totalorder %s1595_s14, %s1731_s6 }
 0x2b1   : > { %p1190_p11 = scmp.lt.s32.totalorder %s1188_s29, %s1184_s7 }
 0x2b2   : > { %p1186_p8 = pnand %p1185_p6, %p1501_p12 }
 0x2b3   : > { %p1191_p0 = por %p1190_p11, %p1189_p10 }
 0x2b4   : > { %p1187_p9 = pneg %p1186_p8 }
 0x2b6   : > { %p1192_p1 = pnand %p1191_p0, %p1187_p9 }
 0x2b8   : > { %1195 = shalt.err (!%p1192_p1)
}
 0x2b9   : > { %s1351_s10 = smov 128   ;;  %s1352_s24 = smov 8  }
 0x2ba   : > { %1044 = dma.vmem_to_hbm [thread:$0]  (%p1501_p12), %s1598_s26, 256, %s1595_s14, %s716_s15, %s1351_s10, %s1351_s10, %s1352_s24  }
 0x2bb   : > { %s950_s17 = sshll.u32 %s1330_s8, 2  ;;  %s735_s21 = sshll.u32 %s313_s22, 4  ;;  %s1629_s21 = int_to_ptr.vmem [resolvable:$true] %s735_s21 }
 0x2bc   : > { %s732_s20 = sadd.s32 %s1326_s30, %s950_s17  ;;  %s1774_s29 = sld [smem:[#allocation25_spill]] }
 0x2bd   : > { %s951_s7 = sshll.u32 %s732_s20, 6  ;;  %s954_s9 = sshll.u32 %s1330_s8, 6 }
 0x2be   : > { %s1776_s0 = sand.u32 1, %s1318_s28   ;;  %s1196_s14 = scalar_lea.vmem %s1629_s21, 128 }
 0x2bf   : > { %s1639_s1 = scalar_lea.sflag [#allocation5], %s1776_s0  ;;  %p1197_p4 = scmp.ne.s32.totalorder %s1629_s21, %s1196_s14 }
 0x2c0   : > { %s1353_s30 = smov [#allocation4]  }
 0x2c1   : > { %p1198_p2 = pnand %p1197_p4, %p1472_p3  ;;  %s1200_s22 = sshll.u32 %s1353_s30, 4  ;;  %s1201_s22 = int_to_ptr.vmem [resolvable:$false] %s1200_s22 }
 0x2c2   : > { %s1775_s5 = smov %s1774_s29  ;;  %s1634_s27 = scalar_lea.hbm %s1774_s29, %s951_s7 }
 0x2c3   : > { %p1199_p5 = pneg %p1198_p2  ;;  %s1202_s16 = scalar_lea.vmem %s1201_s22, 256 }
 0x2c4   : > { %p1203_p6 = scmp.lt.s32.totalorder %s1629_s21, %s1201_s22  ;;  %p1204_p8 = scmp.lt.s32.totalorder %s1202_s16, %s1196_s14 }
 0x2c6   : > { %p1205_p9 = por %p1204_p8, %p1203_p6 }
 0x2c8   : > { %p1206_p10 = pnand %p1205_p9, %p1199_p5 }
 0x2ca   : > { %1209 = shalt.err (!%p1206_p10)
}
 0x2cb   : > { %s1210_s0 = scalar_lea.hbm %s1634_s27, 128  ;;  %s1214_s17 = scalar_lea.hbm %s1775_s5, 512 }
 0x2cc   : > { %p1211_p11 = scmp.ne.s32.totalorder %s1634_s27, %s1210_s0  ;;  %p1215_p4 = scmp.lt.s32.totalorder %s1634_s27, %s1775_s5 }
 0x2cd   : > { %p1216_p2 = scmp.lt.s32.totalorder %s1214_s17, %s1210_s0 }
 0x2ce   : > { %p1212_p0 = pnand %p1211_p11, %p1472_p3 }
 0x2cf   : > { %p1217_p5 = por %p1216_p2, %p1215_p4 }
 0x2d0   : > { %p1213_p1 = pneg %p1212_p0 }
 0x2d2   : > { %p1218_p6 = pnand %p1217_p5, %p1213_p1 }
 0x2d4   : > { %1221 = shalt.err (!%p1218_p6)
}
 0x2d5   : > { %s1354_s23 = smov 64   ;;  %s1355_s12 = smov 4  }
 0x2d6   : > { %1043 = dma.vmem_to_hbm [thread:$0]  (%p1472_p3), %s1629_s21, 128, %s1634_s27, %s1639_s1, %s1354_s23, %s1351_s10, %s1355_s12  }
 0x2d7   : > { %s1777_s30 = sld [smem:[#allocation26_spill]]  ;;  %s1779_s0 = scalar_lea.vmem [#allocation8], %s1525_s18 }
 0x2d8   : > { %s767_s26 = sshll.u32 %s1779_s0, 4  ;;  %s1356_s17 = smov [#allocation8]   ;;  %s768_s26 = int_to_ptr.vmem [resolvable:$true] %s767_s26 }
 0x2d9   : > { %s1222_s24 = scalar_lea.vmem %s768_s26, 64  ;;  %s1226_s20 = sshll.u32 %s1356_s17, 4  ;;  %s1227_s20 = int_to_ptr.vmem [resolvable:$false] %s1226_s20 }
 0x2da   : > { %p1223_p8 = scmp.ne.s32.totalorder %s768_s26, %s1222_s24  ;;  %s1228_s7 = scalar_lea.vmem %s1227_s20, 128 }
 0x2db   : > { %p1229_p11 = scmp.lt.s32.totalorder %s768_s26, %s1227_s20  ;;  %p1230_p0 = scmp.lt.s32.totalorder %s1228_s7, %s1222_s24 }
 0x2dc   : > { %p1224_p9 = pnand %p1223_p8, %p1501_p12 }
 0x2dd   : > { %s1778_s22 = smov %s1777_s30  ;;  %s765_s16 = scalar_lea.hbm %s1777_s30, %s954_s9 }
 0x2de   : > { %p1225_p10 = pneg %p1224_p9  ;;  %p1231_p3 = por %p1230_p0, %p1229_p11 }
 0x2e0   : > { %p1232_p1 = pnand %p1231_p3, %p1225_p10 }
 0x2e2   : > { %1235 = shalt.err (!%p1232_p1)
}
 0x2e3   : > { %s1236_s1 = scalar_lea.hbm %s765_s16, 64  ;;  %s1240_s18 = scalar_lea.hbm %s1778_s22, 128 }
 0x2e4   : > { %p1237_p4 = scmp.ne.s32.totalorder %s765_s16, %s1236_s1  ;;  %p1241_p6 = scmp.lt.s32.totalorder %s765_s16, %s1778_s22 }
 0x2e5   : > { %p1242_p8 = scmp.lt.s32.totalorder %s1240_s18, %s1236_s1 }
 0x2e6   : > { %p1238_p2 = pnand %p1237_p4, %p1501_p12 }
 0x2e7   : > { %p1243_p9 = por %p1242_p8, %p1241_p6 }
 0x2e8   : > { %p1239_p5 = pneg %p1238_p2 }
 0x2ea   : > { %p1244_p13 = pnand %p1243_p9, %p1239_p5 }
 0x2ec   : > { %1247 = shalt.err (!%p1244_p13)
}
 0x2ed   : > { %1045 = dma.vmem_to_hbm [thread:$0]  (%p1501_p12), %s768_s26, 64, %s765_s16, %s716_s15  }
 0x2ee PF: > { %s1780_s27 = sld [smem:[#allocation13_spill]]  ;;  %p1059_p10 = scmp.ge.s32.totalorder %s1342_s11, 2 }
 0x2f0   : > { %p1050_p11 = pnand %p1059_p10, %p1489_p7 }
 0x2f2   : > { %p1051_p0 = pneg %p1050_p11 }
 0x2f4   : > { %s779_s23 = sand.u32 1, %s1780_s27  }
 0x2f5   : > { %s780_s12 = scalar_lea.sflag [#allocation5], %s779_s23 }
 0x2f6   : > { %1293 = dma.done.wait (%p1051_p0), %s780_s12, 128  }
 0x2f7   : > { %1295 = vsyncadd (%p1051_p0), %s780_s12, 4294967168  ;;  %s1782_s29 = sadd.s32 4294967294, %s1342_s11   ;;  %s1783_s14 = sld [smem:[#allocation22_spill]] }
 0x2f8   : > { %s788_s30 = sand.u32 1, %s1782_s29  }
 0x2f9   : > { %s789_s13 = scalar_lea.sflag [#allocation7], %s788_s30 }
 0x2fd   : > { %p1784_p13 = scmp.ne.s32.totalorder %s1783_s14, 0 }
 0x2ff   : > { %p1053_p3 = pnand %p1059_p10, %p1784_p13 }
 0x301   : > { %p1054_p1 = pneg %p1053_p3 }
 0x303   : > { %1297 = dma.done.wait (%p1054_p1), %s789_s13, 320  }
 0x304   : > { %1299 = vsyncadd (%p1054_p1), %s789_s13, 4294966976  ;;  %s24_s11 = sadd.s32 1, %s1342_s11   ;;  %s1785_s24 = sld [smem:[#allocation11_spill]] }
 0x305   : > { %p21_p12 = scmp.ge.s32.totalorder %s24_s11, 6   ;;  %s1786_s25 = sld [smem:[#allocation12_spill]] }
 0x306   : > { %s1787_s26 = sld [smem:[#allocation20_spill]]  ;;  %s1794_s27 = smov %s1318_s28 }
 0x307   : > { %s1788_s15 = sld [smem:[#allocation14_spill]] }
 0x308   : > { %s1789_s29 = sld [smem:[#allocation21_spill]] }
 0x309   : > { %s1790_s30 = sld [smem:[#allocation15_spill]]  ;;  %23 = sbr.rel (!%p21_p12) target bundleno = 14 (0xe), region = 118 }
 0x30a   : > { %s1791_s8 = sld [smem:[#allocation16_spill]] }
 0x30b   : > { %s1792_s9 = sld [smem:[#allocation17_spill]] }
 0x30c   : > { %s1793_s10 = sld [smem:[#allocation18_spill]] }
 0x30d   : > { %s1795_s28 = smov %s1788_s15 }
 0x30e   :  { %803 = vsyncpa [#allocation5], 1 }
 0x30f   :  { %805 = vsyncpa [#allocation5 + $0x1], 1 }
 0x310   :  { %806 = vsyncpa [#allocation7], 1 }
 0x311   :  { %808 = vsyncpa [#allocation7 + $0x1], 1 }

</bundles_post_ra>
